<compile_context>
chip_gen: v7x
topology: tpu7x:2x2x1
jax: 0.10.0
libtpu: 0.0.40
codegen_flags: <defaults>
</compile_context>

<pallas_src>
import functools

import jax
import jax.numpy as jnp
from jax.experimental import pallas as pl
from jax.experimental.pallas import tpu as pltpu


def _mlp_kernel(x_ref, w1_ref, b1_ref, w2_ref, b2_ref, w3t_ref, b3_ref, o_ref):
    # x arrives as f32; cast to bf16 in-kernel so the wrapper does no extra
    # mem-bound HBM pass. Matmuls accumulate in f32 on the MXU; all elementwise
    # math (bias, ReLU, layer-3 reduce) is f32 on the VPU/XLU.
    x = x_ref[...].astype(jnp.bfloat16)                       # (tb, 32) bf16

    h1 = jnp.dot(x, w1_ref[...],
                 preferred_element_type=jnp.float32) + b1_ref[...]
    h1 = jnp.maximum(h1, 0.0)                                 # (tb, 256) f32

    h2 = jnp.dot(h1.astype(jnp.bfloat16), w2_ref[...],
                 preferred_element_type=jnp.float32) + b2_ref[...]
    h2 = jnp.maximum(h2, 0.0)                                 # (tb, 256) f32

    # Layer 3: N=1 -> keep it off the MXU. VPU multiply + lane reduce, f32.
    h3 = jnp.sum(h2 * w3t_ref[...], axis=-1, keepdims=True) + b3_ref[0]
    h3 = jnp.maximum(h3, 0.0)                                 # (tb, 1) f32

    o_ref[...] = h3.astype(o_ref.dtype)


def _round_up(x, m):
    return ((x + m - 1) // m) * m


@functools.partial(jax.jit, static_argnames=("tile_b",))
def mutual_info_system_forward(x, params, *, tile_b=2048):
    """x: (B, 32) float32 -> (B, 1) float32. Same semantics as the PyTorch module
    (bf16 MXU feed, f32 accumulation — see numerics note above)."""
    w1, b1, w2, b2, w3t, b3 = params
    B = x.shape[0]

    if B <= 256:
        # Single (possibly partial) block, no over-padding of tiny batches.
        tb = max(_round_up(B, 8), 8)
    else:
        # Multiple of 256 (MXU M granularity on v6e/v7x, multiple of 128 for
        # v5e); cap so there are >= 2 tiles and v7x's two TCs both get work.
        tb = min(tile_b, _round_up(pl.cdiv(B, 2), 256))
    nb = pl.cdiv(B, tb)

    weight_bytes = (32 * 256 + 256 * 256) * 2 + (256 + 256 + 256 + 1) * 4
    cost = pl.CostEstimate(
        flops=2 * B * (32 * 256 + 256 * 256) + 2 * B * 256,
        transcendentals=0,
        bytes_accessed=B * (32 * 4 + 1 * 4) + weight_bytes,
    )

    out = pl.pallas_call(
        _mlp_kernel,
        out_shape=jax.ShapeDtypeStruct((B, 1), jnp.float32),
        grid=(nb,),
        in_specs=[
            pl.BlockSpec((tb, 32), lambda i: (i, 0)),      # x tile (f32), streamed
            pl.BlockSpec((32, 256), lambda i: (0, 0)),     # w1 (bf16), VMEM-resident
            pl.BlockSpec((1, 256), lambda i: (0, 0)),      # b1 (f32), resident
            pl.BlockSpec((256, 256), lambda i: (0, 0)),    # w2 (bf16), resident
            pl.BlockSpec((1, 256), lambda i: (0, 0)),      # b2 (f32), resident
            pl.BlockSpec((1, 256), lambda i: (0, 0)),      # w3 row (f32), resident
            pl.BlockSpec(memory_space=pltpu.MemorySpace.SMEM),  # b3 scalar in SMEM
        ],
        out_specs=pl.BlockSpec((tb, 1), lambda i: (i, 0)),
        compiler_params=pltpu.CompilerParams(
            dimension_semantics=("parallel",),
        ),
        cost_estimate=cost,
    )(x, w1, b1, w2, b2, w3t, b3)

    return out


def init_params(key):
    """Deterministic synthetic init with the same logical shapes as the PyTorch
    module. fc1/fc2 weights are stored transposed (in, out) as bf16 (MXU feed);
    fc3 weight keeps the PyTorch (1, 256) row layout in f32 (used on the VPU);
    biases are f32, b3 is a 1-element f32 vector (SMEM scalar)."""
    k1, k2, k3, k4, k5, k6 = jax.random.split(key, 6)
    w1 = (jax.random.normal(k1, (32, 256), jnp.float32) * 0.1).astype(jnp.bfloat16)
    b1 = jax.random.normal(k2, (1, 256), jnp.float32) * 0.1
    w2 = (jax.random.normal(k3, (256, 256), jnp.float32) * 0.05).astype(jnp.bfloat16)
    b2 = jax.random.normal(k4, (1, 256), jnp.float32) * 0.05
    w3t = jax.random.normal(k5, (1, 256), jnp.float32) * 0.05
    b3 = jax.random.normal(k6, (1,), jnp.float32) * 0.05
    return (w1, b1, w2, b2, w3t, b3)


def reference_forward(x, params):
    """Pure-JAX reference with the same numerics (bf16 matmul operands for
    layers 1-2, f32 accumulation, f32 layer 3)."""
    w1, b1, w2, b2, w3t, b3 = params
    h = jnp.maximum(jnp.dot(x.astype(jnp.bfloat16), w1,
                            preferred_element_type=jnp.float32) + b1, 0.0)
    h = jnp.maximum(jnp.dot(h.astype(jnp.bfloat16), w2,
                            preferred_element_type=jnp.float32) + b2, 0.0)
    h = jnp.maximum(h @ w3t.T + b3[0], 0.0)
    return h


if __name__ == "__main__":
    key = jax.random.PRNGKey(0)
    kx, kp = jax.random.split(key)

    B = 64  # small batch; kernel picks the tile size internally
    x = jax.random.normal(kx, (B, 32), jnp.float32)
    params = init_params(kp)

    out = mutual_info_system_forward(x, params)
    out = jax.block_until_ready(out)

    ref = reference_forward(x, params)
    assert out.shape == (B, 1)
    assert jnp.allclose(out, ref, atol=2e-2, rtol=2e-2), "mismatch vs reference"

    print("KERNEL_OK")
</pallas_src>

<mosaic_0001>
module attributes {stable_mosaic.version = 11 : i64} {
  func.func @_mlp_kernel(%arg0: i32, %arg1: memref<64x32xf32, #tpu.memory_space<vmem>>, %arg2: memref<32x256xbf16, #tpu.memory_space<vmem>>, %arg3: memref<1x256xf32, #tpu.memory_space<vmem>>, %arg4: memref<256x256xbf16, #tpu.memory_space<vmem>>, %arg5: memref<1x256xf32, #tpu.memory_space<vmem>>, %arg6: memref<1x256xf32, #tpu.memory_space<vmem>>, %arg7: memref<1xf32, #tpu.memory_space<smem>>, %arg8: memref<64x1xf32, #tpu.memory_space<vmem>>) attributes {dimension_semantics = [#tpu.dimension_semantics<parallel>], iteration_bounds = array<i64: 1>, scalar_prefetch = 0 : i64, scratch_operands = 0 : i64, tpu.core_type = #tpu.core_type<tc>, window_params = [{transform_indices = @transform_0, window_bounds = array<i64: 64, 32>}, {pipeline_mode = #tpu.pipeline_mode<synchronous>, transform_indices = @transform_1, window_bounds = array<i64: 32, 256>}, {pipeline_mode = #tpu.pipeline_mode<synchronous>, transform_indices = @transform_2, window_bounds = array<i64: 1, 256>}, {pipeline_mode = #tpu.pipeline_mode<synchronous>, transform_indices = @transform_3, window_bounds = array<i64: 256, 256>}, {pipeline_mode = #tpu.pipeline_mode<synchronous>, transform_indices = @transform_4, window_bounds = array<i64: 1, 256>}, {pipeline_mode = #tpu.pipeline_mode<synchronous>, transform_indices = @transform_5, window_bounds = array<i64: 1, 256>}, {transform_indices = @transform_6, window_bounds = array<i64: 1>}, {transform_indices = @transform_7, window_bounds = array<i64: 64, 1>}]} {
    %c0 = arith.constant 0 : index
    %c0_0 = arith.constant 0 : index
    %0 = vector.load %arg1[%c0, %c0_0] : memref<64x32xf32, #tpu.memory_space<vmem>>, vector<64x32xf32>
    %1 = arith.truncf %0 : vector<64x32xf32> to vector<64x32xbf16>
    %c0_1 = arith.constant 0 : index
    %c0_2 = arith.constant 0 : index
    %2 = vector.load %arg2[%c0_1, %c0_2] : memref<32x256xbf16, #tpu.memory_space<vmem>>, vector<32x256xbf16>
    %cst = arith.constant dense<0.000000e+00> : vector<64x256xf32>
    %3 = tpu.matmul %1, %2, %cst {dimension_numbers = #tpu.dot_dimension_numbers<[1], [0], [0], [1], [0, 0, 1, 1], [], []>} : vector<64x32xbf16>, vector<32x256xbf16>, vector<64x256xf32> -> vector<64x256xf32>
    %c0_3 = arith.constant 0 : index
    %c0_4 = arith.constant 0 : index
    %4 = vector.load %arg3[%c0_3, %c0_4] : memref<1x256xf32, #tpu.memory_space<vmem>>, vector<1x256xf32>
    %5 = vector.broadcast %4 : vector<1x256xf32> to vector<64x256xf32>
    %6 = arith.addf %3, %5 : vector<64x256xf32>
    %cst_5 = arith.constant 0.000000e+00 : f32
    %7 = vector.broadcast %cst_5 : f32 to vector<64x256xf32>
    %8 = arith.maximumf %6, %7 : vector<64x256xf32>
    %9 = arith.truncf %8 : vector<64x256xf32> to vector<64x256xbf16>
    %c0_6 = arith.constant 0 : index
    %c0_7 = arith.constant 0 : index
    %10 = vector.load %arg4[%c0_6, %c0_7] : memref<256x256xbf16, #tpu.memory_space<vmem>>, vector<256x256xbf16>
    %cst_8 = arith.constant dense<0.000000e+00> : vector<64x256xf32>
    %11 = tpu.matmul %9, %10, %cst_8 {dimension_numbers = #tpu.dot_dimension_numbers<[1], [0], [0], [1], [0, 0, 1, 1], [], []>} : vector<64x256xbf16>, vector<256x256xbf16>, vector<64x256xf32> -> vector<64x256xf32>
    %c0_9 = arith.constant 0 : index
    %c0_10 = arith.constant 0 : index
    %12 = vector.load %arg5[%c0_9, %c0_10] : memref<1x256xf32, #tpu.memory_space<vmem>>, vector<1x256xf32>
    %13 = vector.broadcast %12 : vector<1x256xf32> to vector<64x256xf32>
    %14 = arith.addf %11, %13 : vector<64x256xf32>
    %cst_11 = arith.constant 0.000000e+00 : f32
    %15 = vector.broadcast %cst_11 : f32 to vector<64x256xf32>
    %16 = arith.maximumf %14, %15 : vector<64x256xf32>
    %c0_12 = arith.constant 0 : index
    %c0_13 = arith.constant 0 : index
    %17 = vector.load %arg6[%c0_12, %c0_13] : memref<1x256xf32, #tpu.memory_space<vmem>>, vector<1x256xf32>
    %18 = vector.broadcast %17 : vector<1x256xf32> to vector<64x256xf32>
    %19 = arith.mulf %16, %18 : vector<64x256xf32>
    %cst_14 = arith.constant dense<0.000000e+00> : vector<64xf32>
    %20 = vector.multi_reduction <add>, %19, %cst_14 [1] : vector<64x256xf32> to vector<64xf32>
    %21 = vector.shape_cast %20 : vector<64xf32> to vector<64x1xf32>
    %c0_15 = arith.constant 0 : index
    %22 = memref.load %arg7[%c0_15] : memref<1xf32, #tpu.memory_space<smem>>
    %23 = vector.broadcast %22 : f32 to vector<64x1xf32>
    %24 = arith.addf %21, %23 : vector<64x1xf32>
    %cst_16 = arith.constant 0.000000e+00 : f32
    %25 = vector.broadcast %cst_16 : f32 to vector<64x1xf32>
    %26 = arith.maximumf %24, %25 : vector<64x1xf32>
    %c0_17 = arith.constant 0 : index
    %c0_18 = arith.constant 0 : index
    %27 = vector.load %arg8[%c0_17, %c0_18] : memref<64x1xf32, #tpu.memory_space<vmem>>, vector<64x1xf32>
    tpu.vector_store %arg8[%c0_17, %c0_18], %26 {strides = array<i32>} : memref<64x1xf32, #tpu.memory_space<vmem>>, vector<64x1xf32>,
    return
  }
  func.func @transform_0(%arg0: i32) -> (i32, i32) {
    %c0_i32 = arith.constant 0 : i32
    %c0_i32_0 = arith.constant 0 : i32
    return %arg0, %c0_i32 : i32, i32
  }
  func.func @transform_1(%arg0: i32) -> (i32, i32) {
    %c0_i32 = arith.constant 0 : i32
    %c0_i32_0 = arith.constant 0 : i32
    %c0_i32_1 = arith.constant 0 : i32
    return %c0_i32, %c0_i32_0 : i32, i32
  }
  func.func @transform_2(%arg0: i32) -> (i32, i32) {
    %c0_i32 = arith.constant 0 : i32
    %c0_i32_0 = arith.constant 0 : i32
    %c0_i32_1 = arith.constant 0 : i32
    return %c0_i32, %c0_i32_0 : i32, i32
  }
  func.func @transform_3(%arg0: i32) -> (i32, i32) {
    %c0_i32 = arith.constant 0 : i32
    %c0_i32_0 = arith.constant 0 : i32
    %c0_i32_1 = arith.constant 0 : i32
    return %c0_i32, %c0_i32_0 : i32, i32
  }
  func.func @transform_4(%arg0: i32) -> (i32, i32) {
    %c0_i32 = arith.constant 0 : i32
    %c0_i32_0 = arith.constant 0 : i32
    %c0_i32_1 = arith.constant 0 : i32
    return %c0_i32, %c0_i32_0 : i32, i32
  }
  func.func @transform_5(%arg0: i32) -> (i32, i32) {
    %c0_i32 = arith.constant 0 : i32
    %c0_i32_0 = arith.constant 0 : i32
    %c0_i32_1 = arith.constant 0 : i32
    return %c0_i32, %c0_i32_0 : i32, i32
  }
  func.func @transform_6(%arg0: i32) -> i32 {
    %c0_i32 = arith.constant 0 : i32
    %c0_i32_0 = arith.constant 0 : i32
    return %c0_i32 : i32
  }
  func.func @transform_7(%arg0: i32) -> (i32, i32) {
    %c0_i32 = arith.constant 0 : i32
    %c0_i32_0 = arith.constant 0 : i32
    return %arg0, %c0_i32 : i32, i32
  }
}

</mosaic_0001>

<bundles_post_ra>
// kernel: mutual_info_system_forward.1
= control target key start
LH: loop header
LB: loop body
LE: loop exit
PB: predicated region body
PF: predicated region fallthrough
CT: control target
= control target key end

     0   :  { %13 = vsyncpa [#allocation4], 0  ;;  %s731_s24 = smov [#allocation3]   ;;  %s921_s0 = inlined_call_operand.vmem [shape: f32[64,32], index: 0, kind: input, shape index: {}]   ;;  %s922_s1 = inlined_call_operand.vmem [shape: bf16[32,256], index: 1, kind: input, shape index: {}]   ;;  %s923_s2 = inlined_call_operand.vmem [shape: f32[1,256], index: 2, kind: input, shape index: {}]   ;;  %s924_s3 = inlined_call_operand.hbm [shape: bf16[256,256], index: 3, kind: input, shape index: {}]   ;;  %s925_s4 = inlined_call_operand.vmem [shape: f32[1,256], index: 4, kind: input, shape index: {}]   ;;  %s926_s5 = inlined_call_operand.vmem [shape: f32[1,256], index: 5, kind: input, shape index: {}]   ;;  %s927_s6 = inlined_call_operand.<no memory space> [shape: f32[1], index: 6, kind: input, shape index: {}]   ;;  %s928_s7 = inlined_call_operand.vmem [shape: f32[64,1], index: 7, kind: output, shape index: {}]  }
   0x1   :  { %s25_s25 = sshll.u32 %s731_s24, 4  ;;  %s707_s28 = scalar_lea.hbm %s924_s3, 4096  ;;  %s26_s25 = int_to_ptr.vmem [resolvable:$true] %s25_s25 }
   0x2   :  { %p708_p0 = scmp.ne.s32.totalorder %s924_s3, %s707_s28  ;;  %p711_p1 = scmp.lt.u32.totalorder %s707_s28, %s924_s3 }
   0x4   :  { %p713_p2 = pnand %p711_p1, %p708_p0 }
   0x6   :  { %716 = shalt.err (!%p713_p2)
}
   0x7   :  { %s717_s10 = scalar_lea.vmem %s26_s25, 4096  ;;  %p722_p4 = scmp.lt.s32.totalorder %s26_s25, %s26_s25 }
   0x8   :  { %p718_p3 = scmp.ne.s32.totalorder %s26_s25, %s717_s10  ;;  %p723_p5 = scmp.lt.s32.totalorder %s717_s10, %s717_s10 }
   0xa   :  { %p724_p6 = por %p723_p5, %p722_p4 }
   0xc   :  { %p725_p7 = pnand %p724_p6, %p718_p3 }
   0xe   :  { %728 = shalt.err (!%p725_p7)
}
   0xf   :  { %s732_s11 = smov 128   ;;  %s733_s12 = smov 8  }
  0x10   :  { %31 = dma.hbm_to_vmem [thread:$0]  %s924_s3, 4096, %s26_s25, [#allocation4], %s732_s11, %s732_s11, %s733_s12  }
  0x11   :  { %729 = dma.done.wait [#allocation4], 4096  }
  0x12   :  { %730 = vsyncadd [#allocation4], 4294963200  ;;  %v734_v0 = vmov 0   ;;  %v653_v1 = vld [vmem:[%s922_s1 + $0x4] ss:$8 sps:$4 sm:$0xff]   ;;  %vm90_vm0 = vcmask 261120   ;;  %v60_v49 = vlaneseq }
  0x13   :  { %135 = vmatprep.mubr.bf16.mxu0 %v734_v0  ;;  %v655_v2 = vld [vmem:[%s922_s1] ss:$8 sps:$4 sm:$0xff]   ;;  %103 = vmatprep.subr.bf16.mxu0 %v653_v1  ;;  %v656_v3 = vld [vmem:[%s922_s1 + $0x14] ss:$8 sps:$4 sm:$0xff]   ;;  %v658_v4 = vld [vmem:[%s922_s1 + $0x10] ss:$8 sps:$4 sm:$0xff]  }
  0x14   :  { %104 = vmatpush1.bf16.msra.mxu0 %v655_v2  ;;  %v42_v5 = vld [vmem:[%s921_s0] sm:$0xff]  ;;  %v43_v6 = vld [vmem:[%s921_s0 + $0x8] sm:$0xff]  ;;  %v664_v10 = vld [vmem:[#allocation3 + $0x14] ss:$8 sps:$4 sm:$0xff]   ;;  %v61_v50 = vshrl.u32 %v60_v49, 7  ;;  %vm563_vm1 = vcmask 7168  }
  0x15   :  { %105 = vmatprep.subr.bf16.mxu0 %v656_v3  ;;  %v50_v7 = vpack.c.bf16 %v43_v6, %v42_v5  ;;  %v661_v8 = vld [vmem:[#allocation3 + $0x4] ss:$8 sps:$4 sm:$0xff]   ;;  %v659_v9 = vld [vmem:[#allocation3] ss:$8 sps:$4 sm:$0xff]   ;;  %v44_v11 = vld [vmem:[%s921_s0 + $0x10] sm:$0xff] }
  0x16   :  { %617 = vmatprep.subr.bf16.mxu1 %v661_v8  ;;  %v45_v12 = vld [vmem:[%s921_s0 + $0x18] sm:$0xff]  ;;  %v667_v14 = vld [vmem:[#allocation3 + $0x24] ss:$8 sps:$4 sm:$0xff]   ;;  %v665_v16 = vld [vmem:[#allocation3 + $0x20] ss:$8 sps:$4 sm:$0xff]   ;;  %v827_v51 = vsub.s32 0, %v61_v50 }
  0x17   :  { %633 = vmatpush1.bf16.msra.mxu1 %v659_v9  ;;  %v662_v13 = vld [vmem:[#allocation3 + $0x10] ss:$8 sps:$4 sm:$0xff]   ;;  %v51_v15 = vpack.c.bf16 %v45_v12, %v44_v11  ;;  %v670_v17 = vld [vmem:[#allocation3 + $0x34] ss:$8 sps:$4 sm:$0xff]   ;;  %v46_v18 = vld [vmem:[%s921_s0 + $0x20] sm:$0xff]  ;;  %v832_v53 = vsub.s32 1, %v61_v50 }
  0x18   :  { %106 = vmatpush1.bf16.msra.mxu0 %v658_v4  ;;  %618 = vmatprep.subr.bf16.mxu1 %v664_v10  ;;  %v47_v19 = vld [vmem:[%s921_s0 + $0x28] sm:$0xff]  ;;  %v668_v20 = vld [vmem:[#allocation3 + $0x30] ss:$8 sps:$4 sm:$0xff]   ;;  %v676_v24 = vld [vmem:[#allocation3 + $0x54] ss:$8 sps:$4 sm:$0xff]  }
  0x19   :  { %404 = vmatprep.subr.bf16.mxu0 %v661_v8  ;;  %v673_v21 = vld [vmem:[#allocation3 + $0x44] ss:$8 sps:$4 sm:$0xff]   ;;  %v52_v22 = vpack.c.bf16 %v47_v19, %v46_v18  ;;  %v671_v23 = vld [vmem:[#allocation3 + $0x40] ss:$8 sps:$4 sm:$0xff]   ;;  %v48_v25 = vld [vmem:[%s921_s0 + $0x30] sm:$0xff] }
  0x1a   :  { %v49_v26 = vld [vmem:[%s921_s0 + $0x38] sm:$0xff]  ;;  %v679_v28 = vld [vmem:[#allocation3 + $0x64] ss:$8 sps:$4 sm:$0xff]   ;;  %v677_v30 = vld [vmem:[#allocation3 + $0x60] ss:$8 sps:$4 sm:$0xff]  }
  0x1b   :  { %581 = vmatmul.mubr.msk.bf16.vlgmr.msra.gmra.mrb[0].mxu0 %vm90_vm0, %v50_v7  ;;  %634 = vmatpush1.bf16.msra.mxu1 %v662_v13  ;;  %v674_v27 = vld [vmem:[#allocation3 + $0x50] ss:$8 sps:$4 sm:$0xff]   ;;  %v53_v29 = vpack.c.bf16 %v49_v26, %v48_v25  ;;  %v682_v31 = vld [vmem:[#allocation3 + $0x74] ss:$8 sps:$4 sm:$0xff]   ;;  %v685_v33 = vld [vmem:[#allocation3 + $0x84] ss:$8 sps:$4 sm:$0xff]  }
  0x1c   :  { %145 = vmatprep.mubr.bf16.mxu0 %v734_v0  ;;  %405 = vmatpush1.bf16.msra.mxu0 %v659_v9  ;;  %v680_v32 = vld [vmem:[#allocation3 + $0x70] ss:$8 sps:$4 sm:$0xff]   ;;  %v683_v34 = vld [vmem:[#allocation3 + $0x80] ss:$8 sps:$4 sm:$0xff]   ;;  %v688_v35 = vld [vmem:[#allocation3 + $0x94] ss:$8 sps:$4 sm:$0xff]  }
  0x1d   :  { %406 = vmatprep.subr.bf16.mxu0 %v664_v10  ;;  %619 = vmatprep.subr.bf16.mxu1 %v667_v14  ;;  %v686_v36 = vld [vmem:[#allocation3 + $0x90] ss:$8 sps:$4 sm:$0xff]   ;;  %v691_v37 = vld [vmem:[#allocation3 + $0xa4] ss:$8 sps:$4 sm:$0xff]   ;;  %v689_v38 = vld [vmem:[#allocation3 + $0xa0] ss:$8 sps:$4 sm:$0xff]  }
  0x1e   :  { %v694_v39 = vld [vmem:[#allocation3 + $0xb4] ss:$8 sps:$4 sm:$0xff]   ;;  %v692_v40 = vld [vmem:[#allocation3 + $0xb0] ss:$8 sps:$4 sm:$0xff]   ;;  %v697_v41 = vld [vmem:[#allocation3 + $0xc4] ss:$8 sps:$4 sm:$0xff]  }
  0x1f   :  { %635 = vmatpush1.bf16.msra.mxu1 %v665_v16  ;;  %v695_v42 = vld [vmem:[#allocation3 + $0xc0] ss:$8 sps:$4 sm:$0xff]   ;;  %v700_v43 = vld [vmem:[#allocation3 + $0xd4] ss:$8 sps:$4 sm:$0xff]   ;;  %v698_v44 = vld [vmem:[#allocation3 + $0xd0] ss:$8 sps:$4 sm:$0xff]  }
  0x20   :  { %407 = vmatpush1.bf16.msra.mxu0 %v662_v13  ;;  %620 = vmatprep.subr.bf16.mxu1 %v670_v17  ;;  %v703_v45 = vld [vmem:[#allocation3 + $0xe4] ss:$8 sps:$4 sm:$0xff]   ;;  %v701_v46 = vld [vmem:[#allocation3 + $0xe0] ss:$8 sps:$4 sm:$0xff]   ;;  %v706_v47 = vld [vmem:[#allocation3 + $0xf4] ss:$8 sps:$4 sm:$0xff]  }
  0x21   :  { %408 = vmatprep.subr.bf16.mxu0 %v667_v14  ;;  %v704_v48 = vld [vmem:[#allocation3 + $0xf0] ss:$8 sps:$4 sm:$0xff]   ;;  %v58_v52 = vld [vmem:[%s923_s2] sm:$0x3] }
  0x22   :  { %v63_v54 = vrot.slane %v58_v52, %v827_v51  ;;  %v67_v55 = vrot.slane %v58_v52, %v832_v53  ;;  %v493_v52 = vld [vmem:[%s926_s5] sm:$0x3] }
  0x23   :  { %582 = vmatmul.mubr.msk.bf16.gmra.mrb[4].mxu0 %vm90_vm0, %v51_v15  ;;  %636 = vmatpush1.bf16.msra.mxu1 %v668_v20 }
  0x24   :  { %155 = vmatprep.mubr.bf16.mxu0 %v734_v0  ;;  %409 = vmatpush1.bf16.msra.mxu0 %v665_v16 }
  0x25   :  { %410 = vmatprep.subr.bf16.mxu0 %v670_v17  ;;  %621 = vmatprep.subr.bf16.mxu1 %v673_v21 }
  0x27   :  { %637 = vmatpush1.bf16.msra.mxu1 %v671_v23 }
  0x28   :  { %411 = vmatpush1.bf16.msra.mxu0 %v668_v20  ;;  %622 = vmatprep.subr.bf16.mxu1 %v676_v24 }
  0x29   :  { %412 = vmatprep.subr.bf16.mxu0 %v673_v21 }
  0x2b   :  { %583 = vmatmul.mubr.msk.bf16.gmra.mrb[8].mxu0 %vm90_vm0, %v52_v22  ;;  %638 = vmatpush1.bf16.msra.mxu1 %v674_v27 }
  0x2c   :  { %165 = vmatprep.mubr.bf16.mxu0 %v734_v0  ;;  %413 = vmatpush1.bf16.msra.mxu0 %v671_v23 }
  0x2d   :  { %414 = vmatprep.subr.bf16.mxu0 %v676_v24  ;;  %623 = vmatprep.subr.bf16.mxu1 %v679_v28 }
  0x2f   :  { %639 = vmatpush1.bf16.msra.mxu1 %v677_v30 }
  0x30   :  { %415 = vmatpush1.bf16.msra.mxu0 %v674_v27  ;;  %624 = vmatprep.subr.bf16.mxu1 %v682_v31 }
  0x31   :  { %416 = vmatprep.subr.bf16.mxu0 %v679_v28 }
  0x33   :  { %584 = vmatmul.mubr.msk.bf16.gmra.mrb[12].mxu0 %vm90_vm0, %v53_v29  ;;  %640 = vmatpush1.bf16.msra.mxu1 %v680_v32 }
  0x34   :  { %417 = vmatpush1.bf16.msra.mxu0 %v677_v30  ;;  %625 = vmatprep.subr.bf16.mxu1 %v685_v33 }
  0x35   :  { %418 = vmatprep.subr.bf16.mxu0 %v682_v31 }
  0x37   :  { %641 = vmatpush1.bf16.msra.mxu1 %v683_v34 }
  0x38   :  { %419 = vmatpush1.bf16.msra.mxu0 %v680_v32  ;;  %626 = vmatprep.subr.bf16.mxu1 %v688_v35 }
  0x39   :  { %420 = vmatprep.subr.bf16.mxu0 %v685_v33 }
  0x3b   :  { %642 = vmatpush1.bf16.msra.mxu1 %v686_v36 }
  0x3c   :  { %421 = vmatpush1.bf16.msra.mxu0 %v683_v34  ;;  %627 = vmatprep.subr.bf16.mxu1 %v691_v37 }
  0x3d   :  { %422 = vmatprep.subr.bf16.mxu0 %v688_v35 }
  0x3f   :  { %643 = vmatpush1.bf16.msra.mxu1 %v689_v38 }
  0x40   :  { %423 = vmatpush1.bf16.msra.mxu0 %v686_v36  ;;  %628 = vmatprep.subr.bf16.mxu1 %v694_v39 }
  0x41   :  { %424 = vmatprep.subr.bf16.mxu0 %v691_v37 }
  0x43   :  { %644 = vmatpush1.bf16.msra.mxu1 %v692_v40 }
  0x44   :  { %425 = vmatpush1.bf16.msra.mxu0 %v689_v38  ;;  %629 = vmatprep.subr.bf16.mxu1 %v697_v41 }
  0x45   :  { %426 = vmatprep.subr.bf16.mxu0 %v694_v39 }
  0x47   :  { %645 = vmatpush1.bf16.msra.mxu1 %v695_v42 }
  0x48   :  { %427 = vmatpush1.bf16.msra.mxu0 %v692_v40  ;;  %630 = vmatprep.subr.bf16.mxu1 %v700_v43 }
  0x49   :  { %428 = vmatprep.subr.bf16.mxu0 %v697_v41 }
  0x4b   :  { %646 = vmatpush1.bf16.msra.mxu1 %v698_v44 }
  0x4c   :  { %429 = vmatpush1.bf16.msra.mxu0 %v695_v42  ;;  %631 = vmatprep.subr.bf16.mxu1 %v703_v45 }
  0x4d   :  { %430 = vmatprep.subr.bf16.mxu0 %v700_v43 }
  0x4f   :  { %647 = vmatpush1.bf16.msra.mxu1 %v701_v46 }
  0x50   :  { %431 = vmatpush1.bf16.msra.mxu0 %v698_v44  ;;  %632 = vmatprep.subr.bf16.mxu1 %v706_v47 }
  0x51   :  { %432 = vmatprep.subr.bf16.mxu0 %v703_v45 }
  0x53   :  { %648 = vmatpush1.bf16.msra.mxu1 %v704_v48 }
  0x54   :  { %433 = vmatpush1.bf16.msra.mxu0 %v701_v46 }
  0x55   :  { %434 = vmatprep.subr.bf16.mxu0 %v706_v47 }
  0x58   :  { %435 = vmatpush1.bf16.msra.mxu0 %v704_v48  ;;  %v232_v48 = vld [vmem:[%s925_s4] sm:$0x3] }
  0x59   :  { %v840_v49 = vrot.slane %v232_v48, %v827_v51  ;;  %v843_v50 = vrot.slane %v232_v48, %v832_v53 }
  0xee   :  { %v137_v56 = vpop.f32.mrb[0].mxu0 }
  0xef   :  { %v138_v57 = vadd.f32 %v137_v56, %v63_v54  ;;  %v139_v58 = vpop.f32.mrb[1].mxu0 }
  0xf0   :  { %v140_v59 = vadd.f32 %v139_v58, %v67_v55  ;;  %v141_v60 = vpop.f32.mrb[2].mxu0 }
  0xf1   :  { %v142_v61 = vadd.f32 %v141_v60, %v63_v54  ;;  %v143_v62 = vpop.f32.mrb[3].mxu0  ;;  %v176_v0 = vmax.f32 %v138_v57, 0.0  ;;  %v850_v57 = vrot.slane %v493_v52, %v827_v51  ;;  %v854_v60 = vrot.slane %v493_v52, %v832_v53 }
  0xf2   :  { %v144_v63 = vadd.f32 %v143_v62, %v67_v55  ;;  %v177_v2 = vmax.f32 %v140_v59, 0.0 }
  0xf3   :  { %v178_v1 = vmax.f32 %v142_v61, 0.0 }
  0xf4   :  { %v179_v3 = vmax.f32 %v144_v63, 0.0 }
  0xf5   :  { %v192_v4 = vpack.c.bf16 %v178_v1, %v176_v0 }
  0xf6   :  { %v193_v5 = vpack.c.bf16 %v179_v3, %v177_v2  ;;  %v147_v6 = vpop.f32.mrb[4].mxu0 }
  0xf7   :  { %v148_v7 = vadd.f32 %v147_v6, %v63_v54  ;;  %v149_v8 = vpop.f32.mrb[5].mxu0 }
  0xf8   :  { %v150_v9 = vadd.f32 %v149_v8, %v67_v55  ;;  %v151_v10 = vpop.f32.mrb[6].mxu0  ;;  %436 = vmatprep.mubr.bf16.mxu0 %v193_v5 }
  0xf9   :  { %v152_v11 = vadd.f32 %v151_v10, %v63_v54  ;;  %v153_v12 = vpop.f32.mrb[7].mxu0  ;;  %437 = vmatmul.mubr.bf16.vlgmr.msra.gmra.mrb[16].mxu0 %v192_v4  ;;  %v180_v14 = vmax.f32 %v148_v7, 0.0 }
  0xfa   :  { %v154_v13 = vadd.f32 %v153_v12, %v67_v55  ;;  %v181_v16 = vmax.f32 %v150_v9, 0.0 }
  0xfb   :  { %v182_v15 = vmax.f32 %v152_v11, 0.0 }
  0xfc   :  { %v183_v17 = vmax.f32 %v154_v13, 0.0 }
  0xfd   :  { %v194_v18 = vpack.c.bf16 %v182_v15, %v180_v14 }
  0xfe   :  { %v157_v19 = vpop.f32.mrb[8].mxu0  ;;  %v195_v20 = vpack.c.bf16 %v183_v17, %v181_v16 }
  0xff   :  { %v158_v21 = vadd.f32 %v157_v19, %v63_v54  ;;  %v159_v22 = vpop.f32.mrb[9].mxu0 }
 0x100   :  { %v160_v23 = vadd.f32 %v159_v22, %v67_v55  ;;  %v161_v24 = vpop.f32.mrb[10].mxu0  ;;  %446 = vmatprep.mubr.bf16.mxu1 %v195_v20 }
 0x101   :  { %v162_v25 = vadd.f32 %v161_v24, %v63_v54  ;;  %v163_v26 = vpop.f32.mrb[11].mxu0  ;;  %447 = vmatmul.mubr.bf16.vlgmr.msra.gmra.mrb[0].mxu1 %v194_v18  ;;  %v184_v28 = vmax.f32 %v158_v21, 0.0 }
 0x102   :  { %v164_v27 = vadd.f32 %v163_v26, %v67_v55  ;;  %v185_v30 = vmax.f32 %v160_v23, 0.0 }
 0x103   :  { %v186_v29 = vmax.f32 %v162_v25, 0.0 }
 0x104   :  { %v187_v31 = vmax.f32 %v164_v27, 0.0 }
 0x105   :  { %v196_v32 = vpack.c.bf16 %v186_v29, %v184_v28 }
 0x106   :  { %v197_v33 = vpack.c.bf16 %v187_v31, %v185_v30  ;;  %v167_v34 = vpop.f32.mrb[12].mxu0 }
 0x107   :  { %v168_v35 = vadd.f32 %v167_v34, %v63_v54  ;;  %v169_v36 = vpop.f32.mrb[13].mxu0 }
 0x108   :  { %v170_v37 = vadd.f32 %v169_v36, %v67_v55  ;;  %v171_v38 = vpop.f32.mrb[14].mxu0  ;;  %456 = vmatprep.mubr.bf16.mxu1 %v197_v33 }
 0x109   :  { %v172_v39 = vadd.f32 %v171_v38, %v63_v54  ;;  %v173_v40 = vpop.f32.mrb[15].mxu0  ;;  %457 = vmatmul.mubr.bf16.gmra.mrb[4].mxu1 %v196_v32  ;;  %v188_v42 = vmax.f32 %v168_v35, 0.0 }
 0x10a   :  { %v174_v41 = vadd.f32 %v173_v40, %v67_v55  ;;  %v189_v44 = vmax.f32 %v170_v37, 0.0 }
 0x10b   :  { %v190_v43 = vmax.f32 %v172_v39, 0.0 }
 0x10c   :  { %v191_v45 = vmax.f32 %v174_v41, 0.0 }
 0x10d   :  { %v198_v46 = vpack.c.bf16 %v190_v43, %v188_v42 }
 0x10e   :  { %v199_v47 = vpack.c.bf16 %v191_v45, %v189_v44 }
 0x110   :  { %466 = vmatprep.mubr.bf16.mxu1 %v199_v47 }
 0x111   :  { %467 = vmatmul.mubr.bf16.gmra.mrb[8].mxu1 %v198_v46 }
 0x1cc   :  { %v438_v54 = vpop.f32.mrb[16].mxu0 }
 0x1cd   :  { %v439_v55 = vadd.f32 %v438_v54, %v840_v49  ;;  %v440_v56 = vpop.f32.mrb[17].mxu0 }
 0x1ce   :  { %v441_v58 = vadd.f32 %v440_v56, %v843_v50  ;;  %v442_v59 = vpop.f32.mrb[18].mxu0 }
 0x1cf   :  { %v477_v61 = vmax.f32 %v439_v55, 0.0  ;;  %v443_v62 = vadd.f32 %v442_v59, %v840_v49  ;;  %v444_v63 = vpop.f32.mrb[19].mxu0 }
 0x1d0   :  { %v478_v0 = vmax.f32 %v441_v58, 0.0  ;;  %v445_v1 = vadd.f32 %v444_v63, %v843_v50 }
 0x1d1   :  { %v479_v2 = vmax.f32 %v443_v62, 0.0  ;;  %v505_v3 = vmul.f32 %v850_v57, %v477_v61 }
 0x1d2   :  { %v480_v4 = vmax.f32 %v445_v1, 0.0  ;;  %v506_v51 = vmul.f32 %v854_v60, %v478_v0 }
 0x1d3   :  { %v507_v5 = vmul.f32 %v850_v57, %v479_v2 }
 0x1d4   :  { %v508_v6 = vmul.f32 %v854_v60, %v480_v4  ;;  %v448_v7 = vpop.f32.mrb[0].mxu1  ;;  %v521_v53 = vadd.f32 %v506_v51, %v505_v3 }
 0x1d5   :  { %v449_v8 = vadd.f32 %v448_v7, %v840_v49  ;;  %v450_v9 = vpop.f32.mrb[1].mxu1 }
 0x1d6   :  { %v451_v10 = vadd.f32 %v450_v9, %v843_v50  ;;  %v452_v11 = vpop.f32.mrb[2].mxu1  ;;  %522 = vadd.xlane.f32.xlu0 %v521_v53  ;;  %v524_v12 = vadd.f32 %v508_v6, %v507_v5 }
 0x1d7   :  { %v481_v13 = vmax.f32 %v449_v8, 0.0  ;;  %v453_v14 = vadd.f32 %v452_v11, %v840_v49  ;;  %v454_v15 = vpop.f32.mrb[3].mxu1 }
 0x1d8   :  { %v482_v16 = vmax.f32 %v451_v10, 0.0  ;;  %v455_v17 = vadd.f32 %v454_v15, %v843_v50 }
 0x1d9   :  { %v483_v18 = vmax.f32 %v453_v14, 0.0  ;;  %v509_v19 = vmul.f32 %v850_v57, %v481_v13 }
 0x1da   :  { %v484_v20 = vmax.f32 %v455_v17, 0.0  ;;  %525 = vadd.xlane.f32.xlu0 %v524_v12  ;;  %v510_v21 = vmul.f32 %v854_v60, %v482_v16 }
 0x1db   :  { %v511_v22 = vmul.f32 %v850_v57, %v483_v18 }
 0x1dc   :  { %v512_v23 = vmul.f32 %v854_v60, %v484_v20  ;;  %v458_v24 = vpop.f32.mrb[4].mxu1  ;;  %v527_v25 = vadd.f32 %v510_v21, %v509_v19 }
 0x1dd   :  { %v459_v26 = vadd.f32 %v458_v24, %v840_v49  ;;  %v460_v27 = vpop.f32.mrb[5].mxu1 }
 0x1de   :  { %v461_v28 = vadd.f32 %v460_v27, %v843_v50  ;;  %v462_v29 = vpop.f32.mrb[6].mxu1  ;;  %528 = vadd.xlane.f32.xlu1 %v527_v25  ;;  %v530_v30 = vadd.f32 %v512_v23, %v511_v22 }
 0x1df   :  { %v485_v31 = vmax.f32 %v459_v26, 0.0  ;;  %v463_v32 = vadd.f32 %v462_v29, %v840_v49  ;;  %v464_v33 = vpop.f32.mrb[7].mxu1 }
 0x1e0   :  { %v486_v34 = vmax.f32 %v461_v28, 0.0  ;;  %v465_v35 = vadd.f32 %v464_v33, %v843_v50 }
 0x1e1   :  { %v513_v36 = vmul.f32 %v850_v57, %v485_v31  ;;  %v487_v37 = vmax.f32 %v463_v32, 0.0 }
 0x1e2   :  { %v514_v38 = vmul.f32 %v854_v60, %v486_v34  ;;  %v488_v39 = vmax.f32 %v465_v35, 0.0  ;;  %531 = vadd.xlane.f32.xlu1 %v530_v30 }
 0x1e3   :  { %v515_v40 = vmul.f32 %v850_v57, %v487_v37 }
 0x1e4   :  { %v516_v41 = vmul.f32 %v854_v60, %v488_v39  ;;  %v468_v42 = vpop.f32.mrb[8].mxu1  ;;  %v533_v43 = vadd.f32 %v514_v38, %v513_v36 }
 0x1e5   :  { %v469_v44 = vadd.f32 %v468_v42, %v840_v49  ;;  %v470_v45 = vpop.f32.mrb[9].mxu1 }
 0x1e6   :  { %v471_v46 = vadd.f32 %v470_v45, %v843_v50  ;;  %v472_v47 = vpop.f32.mrb[10].mxu1  ;;  %534 = vadd.xlane.f32.xlu0 %v533_v43  ;;  %v536_v48 = vadd.f32 %v516_v41, %v515_v40 }
 0x1e7   :  { %v489_v52 = vmax.f32 %v469_v44, 0.0  ;;  %v473_v54 = vadd.f32 %v472_v47, %v840_v49  ;;  %v474_v55 = vpop.f32.mrb[11].mxu1  ;;  %v546_v49 = vstv %s927_s6 }
 0x1e8   :  { %v490_v56 = vmax.f32 %v471_v46, 0.0  ;;  %v475_v58 = vadd.f32 %v474_v55, %v843_v50  ;;  %537 = vadd.xlane.f32.xlu1 %v536_v48 }
 0x1e9   :  { %v517_v59 = vmul.f32 %v850_v57, %v489_v52  ;;  %v491_v61 = vmax.f32 %v473_v54, 0.0 }
 0x1ea   :  { %v518_v62 = vmul.f32 %v854_v60, %v490_v56  ;;  %v492_v63 = vmax.f32 %v475_v58, 0.0 }
 0x1eb   :  { %v519_v0 = vmul.f32 %v850_v57, %v491_v61 }
 0x1ec   :  { %v520_v1 = vmul.f32 %v854_v60, %v492_v63  ;;  %v539_v2 = vadd.f32 %v518_v62, %v517_v59 }
 0x1ee   :  { %540 = vadd.xlane.f32.xlu0 %v539_v2  ;;  %v542_v3 = vadd.f32 %v520_v1, %v519_v0 }
 0x1f0   :  { %543 = vadd.xlane.f32.xlu1 %v542_v3 }
 0x263   :  { %v523_v50 = vpop.xlane.xlu0 %522 }
 0x264   :  { %v547_v4 = vadd.f32 %v546_v49, %v523_v50 }
 0x266   :  { %v555_v51 = vmax.f32 %v547_v4, 0.0 }
 0x267   :  { %v526_v5 = vpop.xlane.xlu0 %525 }
 0x268   :  { %564 = vst.msk [vmem:[%s928_s7] sm:$0xff] %vm563_vm1, %v555_v51  ;;  %v548_v57 = vadd.f32 %v546_v49, %v526_v5 }
 0x26a   :  { %v556_v60 = vmax.f32 %v548_v57, 0.0 }
 0x26b   :  { %v529_v6 = vpop.xlane.xlu1 %528 }
 0x26c   :  { %565 = vst.msk [vmem:[%s928_s7 + $0x8] sm:$0xff] %vm563_vm1, %v556_v60  ;;  %v549_v7 = vadd.f32 %v546_v49, %v529_v6 }
 0x26e   :  { %v557_v53 = vmax.f32 %v549_v7, 0.0 }
 0x26f   :  { %v532_v8 = vpop.xlane.xlu1 %531 }
 0x270   :  { %566 = vst.msk [vmem:[%s928_s7 + $0x10] sm:$0xff] %vm563_vm1, %v557_v53  ;;  %v550_v9 = vadd.f32 %v546_v49, %v532_v8 }
 0x272   :  { %v558_v10 = vmax.f32 %v550_v9, 0.0 }
 0x273   :  { %v535_v11 = vpop.xlane.xlu0 %534 }
 0x274   :  { %567 = vst.msk [vmem:[%s928_s7 + $0x18] sm:$0xff] %vm563_vm1, %v558_v10  ;;  %v551_v12 = vadd.f32 %v546_v49, %v535_v11 }
 0x275   :  { %v538_v13 = vpop.xlane.xlu1 %537 }
 0x276   :  { %v559_v14 = vmax.f32 %v551_v12, 0.0  ;;  %v552_v15 = vadd.f32 %v546_v49, %v538_v13 }
 0x278   :  { %568 = vst.msk [vmem:[%s928_s7 + $0x20] sm:$0xff] %vm563_vm1, %v559_v14  ;;  %v560_v16 = vmax.f32 %v552_v15, 0.0 }
 0x27a   :  { %569 = vst.msk [vmem:[%s928_s7 + $0x28] sm:$0xff] %vm563_vm1, %v560_v16 }
 0x27b   :  { %v541_v17 = vpop.xlane.xlu0 %540 }
 0x27c   :  { %v553_v18 = vadd.f32 %v546_v49, %v541_v17 }
 0x27d   :  { %v544_v19 = vpop.xlane.xlu1 %543 }
 0x27e   :  { %v561_v20 = vmax.f32 %v553_v18, 0.0  ;;  %v554_v21 = vadd.f32 %v546_v49, %v544_v19 }
 0x280   :  { %570 = vst.msk [vmem:[%s928_s7 + $0x30] sm:$0xff] %vm563_vm1, %v561_v20  ;;  %v562_v22 = vmax.f32 %v554_v21, 0.0 }
 0x282   :  { %571 = vst.msk [vmem:[%s928_s7 + $0x38] sm:$0xff] %vm563_vm1, %v562_v22 }
 0x283   :  { %576 = vsyncpa [#allocation4], 1 }

</bundles_post_ra>
